<compile_context>
chip_gen: v5e
topology: v5e:2x2
jax: 0.10.0
libtpu: 0.0.40
codegen_flags: <defaults>
</compile_context>

<pallas_src>
import functools

import jax
import jax.numpy as jnp
from jax.experimental import pallas as pl
from jax.experimental.pallas import tpu as pltpu


PACK = 4      # batch rows packed into one lane-dense row (4 * 32 = 128 lanes)
_SUB = 16     # sublane granularity for bf16 tiles


def _mlp_kernel(x_ref, w1_ref, b1_ref, w2_ref, b2_ref, w3_ref, b3_ref, o_ref):
    # x_ref: (bb_p, PACK*D) bf16; weights block-diagonal bf16; biases f32.
    x = x_ref[...]
    # Layer 1 (packed): (bb_p, 128) @ (128, 256) -> f32 acc, bias + ReLU in f32.
    h1 = jnp.dot(x, w1_ref[...], preferred_element_type=jnp.float32)
    h1 = jnp.maximum(h1 + b1_ref[...], 0.0)
    # Layer 2 (packed): (bb_p, 256) @ (256, 128).
    h2 = jnp.dot(h1.astype(jnp.bfloat16), w2_ref[...],
                 preferred_element_type=jnp.float32)
    h2 = jnp.maximum(h2 + b2_ref[...], 0.0)
    # Layer 3 (packed): (bb_p, 128) @ (128, 4) -> one scalar per original row.
    out = jnp.dot(h2.astype(jnp.bfloat16), w3_ref[...],
                  preferred_element_type=jnp.float32)
    o_ref[...] = (out + b3_ref[...]).astype(o_ref.dtype)


def _round_up(x, m):
    return ((x + m - 1) // m) * m


def _block_diag(w, pack):
    # (k, n) -> (pack*k, pack*n) with w on the diagonal blocks.
    return jnp.kron(jnp.eye(pack, dtype=w.dtype), w)


@functools.partial(jax.jit, static_argnames=("block_b",))
def mlp_forward(x, w1, b1, w2, b2, w3, b3, *, block_b=4096):
    B, D = x.shape
    H1 = w1.shape[1]
    H2 = w2.shape[1]
    O = w3.shape[1]  # == 1 for this MLP

    Dp, H1p, H2p, Op = PACK * D, PACK * H1, PACK * H2, PACK * O

    # ---- scoped-VMEM budget (generation-aware, explicit limit) -------------
    try:
        info = pltpu.get_tpu_info()
        phys_vmem = int(getattr(info, "vmem_capacity_bytes",
                                64 * 1024 * 1024))
    except Exception:  # pragma: no cover - conservative fallback
        phys_vmem = 64 * 1024 * 1024
    vmem_limit = int(min(phys_vmem // 2, 48 * 1024 * 1024))
    vmem_budget = int(vmem_limit * 0.7)

    # ---- per-packed-row VMEM bytes, with lane padding to 128 ---------------
    lane = 128

    def _lane_pad(n, itemsize):
        return _round_up(n, lane) * itemsize

    x_row = _lane_pad(Dp, 2)                              # bf16 input tile
    out_row = _lane_pad(Op, 4)                            # f32 output tile
    act_row = (_lane_pad(H1p, 4) + _lane_pad(H1p, 2)      # h1 f32 + bf16 copy
               + _lane_pad(H2p, 4) + _lane_pad(H2p, 2)    # h2 f32 + bf16 copy
               + _lane_pad(Op, 4))                        # pre-store result
    # 2x double-buffering only applies to the pipelined x / out tiles.
    bytes_per_row = 2 * (x_row + out_row) + act_row
    max_rows = max(_SUB, (vmem_budget // bytes_per_row) // _SUB * _SUB)

    # ---- batch tile in packed rows ------------------------------------------
    B_packed = pl.cdiv(B, PACK)
    bb_p = max(_SUB, _round_up(block_b // PACK, _SUB))
    bb_p = min(bb_p, max_rows, _round_up(B_packed, _SUB))
    # v7x: keep grid_b >= 2 when there is enough work, so both TensorCores run.
    if B_packed >= 2 * _SUB:
        bb_p = min(bb_p, _round_up(pl.cdiv(B_packed, 2), _SUB))

    grid_b = pl.cdiv(B_packed, bb_p)
    Bp_pad = grid_b * bb_p
    B_pad = Bp_pad * PACK

    # ---- pack inputs / build block-diagonal weights (once, in the wrapper) --
    x_pad = jnp.pad(x, ((0, B_pad - B), (0, 0))) if B_pad != B else x
    x_packed = x_pad.reshape(Bp_pad, Dp).astype(jnp.bfloat16)

    w1_bd = _block_diag(w1, PACK).astype(jnp.bfloat16)    # (Dp,  H1p)
    w2_bd = _block_diag(w2, PACK).astype(jnp.bfloat16)    # (H1p, H2p)
    w3_bd = _block_diag(w3, PACK).astype(jnp.bfloat16)    # (H2p, Op)
    b1_t = jnp.tile(b1.reshape(1, H1), (1, PACK)).astype(jnp.float32)
    b2_t = jnp.tile(b2.reshape(1, H2), (1, PACK)).astype(jnp.float32)
    b3_t = jnp.tile(b3.reshape(1, O), (1, PACK)).astype(jnp.float32)

    in_specs = [
        pl.BlockSpec((bb_p, Dp), lambda i: (i, 0)),   # x tile (batch-blocked)
        pl.BlockSpec((Dp, H1p), lambda i: (0, 0)),    # weights/biases resident
        pl.BlockSpec((1, H1p), lambda i: (0, 0)),     # (constant index_map)
        pl.BlockSpec((H1p, H2p), lambda i: (0, 0)),
        pl.BlockSpec((1, H2p), lambda i: (0, 0)),
        pl.BlockSpec((H2p, Op), lambda i: (0, 0)),
        pl.BlockSpec((1, Op), lambda i: (0, 0)),
    ]
    out_specs = pl.BlockSpec((bb_p, Op), lambda i: (i, 0))

    cost = pl.CostEstimate(
        flops=2 * B_pad * (D * H1 + H1 * H2 + H2 * O),
        transcendentals=0,
        bytes_accessed=(2 * B_pad * D + 4 * B_pad * O
                        + 2 * (Dp * H1p + H1p * H2p + H2p * Op)
                        + 4 * (H1p + H2p + Op)),
    )

    out = pl.pallas_call(
        _mlp_kernel,
        out_shape=jax.ShapeDtypeStruct((Bp_pad, Op), jnp.float32),
        grid=(grid_b,),
        in_specs=in_specs,
        out_specs=out_specs,
        compiler_params=pltpu.CompilerParams(
            dimension_semantics=("parallel",),
            vmem_limit_bytes=vmem_limit),
        cost_estimate=cost,
    )(x_packed, w1_bd, b1_t, w2_bd, b2_t, w3_bd, b3_t)

    # Row g of `out` holds [y[PACK*g], ..., y[PACK*g + PACK-1]] -> contiguous
    # reshape to (B_pad, O), then drop the padded tail rows.
    return out.reshape(B_pad, O)[:B]


def init_mlp_params(key, encoded_shape):
    """Deterministic PyTorch-style (uniform +-1/sqrt(fan_in)) init."""
    dims = [(encoded_shape, 64), (64, 32), (32, 1)]
    params = []
    for (fan_in, fan_out) in dims:
        key, kw, kb = jax.random.split(key, 3)
        bound = 1.0 / jnp.sqrt(fan_in)
        w = jax.random.uniform(kw, (fan_in, fan_out), jnp.float32, -bound, bound)
        b = jax.random.uniform(kb, (1, fan_out), jnp.float32, -bound, bound)
        params += [w, b]
    return params


if __name__ == "__main__":
    key = jax.random.PRNGKey(0)
    B, D = 8, 32  # batch=8, encoded_shape=32

    key, kx = jax.random.split(key)
    x = jax.random.normal(kx, (B, D), jnp.float32)

    w1, b1, w2, b2, w3, b3 = init_mlp_params(key, D)

    out = mlp_forward(x, w1, b1, w2, b2, w3, b3)
    out = jax.block_until_ready(out)

    # Reference with the same bf16-operand / f32-accumulate semantics.
    xb = x.astype(jnp.bfloat16)
    h1 = jnp.maximum(
        jnp.dot(xb, w1.astype(jnp.bfloat16),
                preferred_element_type=jnp.float32) + b1, 0.0)
    h2 = jnp.maximum(
        jnp.dot(h1.astype(jnp.bfloat16), w2.astype(jnp.bfloat16),
                preferred_element_type=jnp.float32) + b2, 0.0)
    ref = jnp.dot(h2.astype(jnp.bfloat16), w3.astype(jnp.bfloat16),
                  preferred_element_type=jnp.float32) + b3

    # Loose f32 sanity check as well (bf16 operands => ~1e-2 relative error).
    ref_f32 = jnp.maximum(x @ w1 + b1, 0.0)
    ref_f32 = jnp.maximum(ref_f32 @ w2 + b2, 0.0)
    ref_f32 = ref_f32 @ w3 + b3

    assert out.shape == (B, 1)
    assert jnp.allclose(out, ref, atol=2e-3, rtol=1e-2)
    assert jnp.allclose(out, ref_f32, atol=5e-2, rtol=5e-2)

    print("KERNEL_OK")
</pallas_src>

<mosaic_0001>
module attributes {stable_mosaic.version = 11 : i64} {
  func.func @_mlp_kernel(%arg0: i32, %arg1: memref<16x128xbf16, #tpu.memory_space<vmem>>, %arg2: memref<128x256xbf16, #tpu.memory_space<vmem>>, %arg3: memref<1x256xf32, #tpu.memory_space<vmem>>, %arg4: memref<256x128xbf16, #tpu.memory_space<vmem>>, %arg5: memref<1x128xf32, #tpu.memory_space<vmem>>, %arg6: memref<128x4xbf16, #tpu.memory_space<vmem>>, %arg7: memref<1x4xf32, #tpu.memory_space<vmem>>, %arg8: memref<16x4xf32, #tpu.memory_space<vmem>>) attributes {dimension_semantics = [#tpu.dimension_semantics<parallel>], iteration_bounds = array<i64: 1>, scalar_prefetch = 0 : i64, scratch_operands = 0 : i64, tpu.core_type = #tpu.core_type<tc>, window_params = [{transform_indices = @transform_0, window_bounds = array<i64: 16, 128>}, {pipeline_mode = #tpu.pipeline_mode<synchronous>, transform_indices = @transform_1, window_bounds = array<i64: 128, 256>}, {pipeline_mode = #tpu.pipeline_mode<synchronous>, transform_indices = @transform_2, window_bounds = array<i64: 1, 256>}, {pipeline_mode = #tpu.pipeline_mode<synchronous>, transform_indices = @transform_3, window_bounds = array<i64: 256, 128>}, {pipeline_mode = #tpu.pipeline_mode<synchronous>, transform_indices = @transform_4, window_bounds = array<i64: 1, 128>}, {pipeline_mode = #tpu.pipeline_mode<synchronous>, transform_indices = @transform_5, window_bounds = array<i64: 128, 4>}, {pipeline_mode = #tpu.pipeline_mode<synchronous>, transform_indices = @transform_6, window_bounds = array<i64: 1, 4>}, {transform_indices = @transform_7, window_bounds = array<i64: 16, 4>}]} {
    %c0 = arith.constant 0 : index
    %c0_0 = arith.constant 0 : index
    %0 = vector.load %arg1[%c0, %c0_0] : memref<16x128xbf16, #tpu.memory_space<vmem>>, vector<16x128xbf16>
    %c0_1 = arith.constant 0 : index
    %c0_2 = arith.constant 0 : index
    %1 = vector.load %arg2[%c0_1, %c0_2] : memref<128x256xbf16, #tpu.memory_space<vmem>>, vector<128x256xbf16>
    %cst = arith.constant dense<0.000000e+00> : vector<16x256xf32>
    %2 = tpu.matmul %0, %1, %cst {dimension_numbers = #tpu.dot_dimension_numbers<[1], [0], [0], [1], [0, 0, 1, 1], [], []>} : vector<16x128xbf16>, vector<128x256xbf16>, vector<16x256xf32> -> vector<16x256xf32>
    %c0_3 = arith.constant 0 : index
    %c0_4 = arith.constant 0 : index
    %3 = vector.load %arg3[%c0_3, %c0_4] : memref<1x256xf32, #tpu.memory_space<vmem>>, vector<1x256xf32>
    %4 = vector.broadcast %3 : vector<1x256xf32> to vector<16x256xf32>
    %5 = arith.addf %2, %4 : vector<16x256xf32>
    %cst_5 = arith.constant 0.000000e+00 : f32
    %6 = vector.broadcast %cst_5 : f32 to vector<16x256xf32>
    %7 = arith.maximumf %5, %6 : vector<16x256xf32>
    %8 = arith.truncf %7 : vector<16x256xf32> to vector<16x256xbf16>
    %c0_6 = arith.constant 0 : index
    %c0_7 = arith.constant 0 : index
    %9 = vector.load %arg4[%c0_6, %c0_7] : memref<256x128xbf16, #tpu.memory_space<vmem>>, vector<256x128xbf16>
    %cst_8 = arith.constant dense<0.000000e+00> : vector<16x128xf32>
    %10 = tpu.matmul %8, %9, %cst_8 {dimension_numbers = #tpu.dot_dimension_numbers<[1], [0], [0], [1], [0, 0, 1, 1], [], []>} : vector<16x256xbf16>, vector<256x128xbf16>, vector<16x128xf32> -> vector<16x128xf32>
    %c0_9 = arith.constant 0 : index
    %c0_10 = arith.constant 0 : index
    %11 = vector.load %arg5[%c0_9, %c0_10] : memref<1x128xf32, #tpu.memory_space<vmem>>, vector<1x128xf32>
    %12 = vector.broadcast %11 : vector<1x128xf32> to vector<16x128xf32>
    %13 = arith.addf %10, %12 : vector<16x128xf32>
    %cst_11 = arith.constant 0.000000e+00 : f32
    %14 = vector.broadcast %cst_11 : f32 to vector<16x128xf32>
    %15 = arith.maximumf %13, %14 : vector<16x128xf32>
    %16 = arith.truncf %15 : vector<16x128xf32> to vector<16x128xbf16>
    %c0_12 = arith.constant 0 : index
    %c0_13 = arith.constant 0 : index
    %17 = vector.load %arg6[%c0_12, %c0_13] : memref<128x4xbf16, #tpu.memory_space<vmem>>, vector<128x4xbf16>
    %cst_14 = arith.constant dense<0.000000e+00> : vector<16x4xf32>
    %18 = tpu.matmul %16, %17, %cst_14 {dimension_numbers = #tpu.dot_dimension_numbers<[1], [0], [0], [1], [0, 0, 1, 1], [], []>} : vector<16x128xbf16>, vector<128x4xbf16>, vector<16x4xf32> -> vector<16x4xf32>
    %c0_15 = arith.constant 0 : index
    %c0_16 = arith.constant 0 : index
    %19 = vector.load %arg7[%c0_15, %c0_16] : memref<1x4xf32, #tpu.memory_space<vmem>>, vector<1x4xf32>
    %20 = vector.broadcast %19 : vector<1x4xf32> to vector<16x4xf32>
    %21 = arith.addf %18, %20 : vector<16x4xf32>
    %c0_17 = arith.constant 0 : index
    %c0_18 = arith.constant 0 : index
    %22 = vector.load %arg8[%c0_17, %c0_18] : memref<16x4xf32, #tpu.memory_space<vmem>>, vector<16x4xf32>
    tpu.vector_store %arg8[%c0_17, %c0_18], %21 {strides = array<i32>} : memref<16x4xf32, #tpu.memory_space<vmem>>, vector<16x4xf32>,
    return
  }
  func.func @transform_0(%arg0: i32) -> (i32, i32) {
    %c0_i32 = arith.constant 0 : i32
    %c0_i32_0 = arith.constant 0 : i32
    return %arg0, %c0_i32 : i32, i32
  }
  func.func @transform_1(%arg0: i32) -> (i32, i32) {
    %c0_i32 = arith.constant 0 : i32
    %c0_i32_0 = arith.constant 0 : i32
    %c0_i32_1 = arith.constant 0 : i32
    return %c0_i32, %c0_i32_0 : i32, i32
  }
  func.func @transform_2(%arg0: i32) -> (i32, i32) {
    %c0_i32 = arith.constant 0 : i32
    %c0_i32_0 = arith.constant 0 : i32
    %c0_i32_1 = arith.constant 0 : i32
    return %c0_i32, %c0_i32_0 : i32, i32
  }
  func.func @transform_3(%arg0: i32) -> (i32, i32) {
    %c0_i32 = arith.constant 0 : i32
    %c0_i32_0 = arith.constant 0 : i32
    %c0_i32_1 = arith.constant 0 : i32
    return %c0_i32, %c0_i32_0 : i32, i32
  }
  func.func @transform_4(%arg0: i32) -> (i32, i32) {
    %c0_i32 = arith.constant 0 : i32
    %c0_i32_0 = arith.constant 0 : i32
    %c0_i32_1 = arith.constant 0 : i32
    return %c0_i32, %c0_i32_0 : i32, i32
  }
  func.func @transform_5(%arg0: i32) -> (i32, i32) {
    %c0_i32 = arith.constant 0 : i32
    %c0_i32_0 = arith.constant 0 : i32
    %c0_i32_1 = arith.constant 0 : i32
    return %c0_i32, %c0_i32_0 : i32, i32
  }
  func.func @transform_6(%arg0: i32) -> (i32, i32) {
    %c0_i32 = arith.constant 0 : i32
    %c0_i32_0 = arith.constant 0 : i32
    %c0_i32_1 = arith.constant 0 : i32
    return %c0_i32, %c0_i32_0 : i32, i32
  }
  func.func @transform_7(%arg0: i32) -> (i32, i32) {
    %c0_i32 = arith.constant 0 : i32
    %c0_i32_0 = arith.constant 0 : i32
    return %arg0, %c0_i32 : i32, i32
  }
}

</mosaic_0001>

<bundles_post_ra>
// kernel: mlp_forward.1
= control target key start
LH: loop header
LB: loop body
LE: loop exit
PB: predicated region body
PF: predicated region fallthrough
CT: control target
= control target key end

     0   :  { %vm415_vm0 = vcmask 31744   ;;  %s855_s1 = inlined_call_operand.vmem [shape: bf16[128,256], index: 1, kind: input, shape index: {}]   ;;  %s856_s3 = inlined_call_operand.vmem [shape: bf16[256,128], index: 3, kind: input, shape index: {}]   ;;  %s857_s0 = inlined_call_operand.vmem [shape: bf16[16,128], index: 0, kind: input, shape index: {}]   ;;  %s858_s4 = inlined_call_operand.vmem [shape: f32[1,128], index: 4, kind: input, shape index: {}]   ;;  %s859_s5 = inlined_call_operand.vmem [shape: bf16[128,4], index: 5, kind: input, shape index: {}]   ;;  %s860_s2 = inlined_call_operand.vmem [shape: f32[1,256], index: 2, kind: input, shape index: {}]   ;;  %s861_s6 = inlined_call_operand.vmem [shape: f32[1,4], index: 6, kind: input, shape index: {}]   ;;  %s862_s7 = inlined_call_operand.vmem [shape: f32[16,4], index: 7, kind: output, shape index: {}]  }
   0x1   :  { %v484_v0 = vld [vmem:[%s855_s1 + $0x70] sm:$0xf]  ;;  %v602_v1 = vld [vmem:[%s855_s1 + $0x74] sm:$0xf0]  ;;  %v601_v2 = vld [vmem:[%s855_s1 + $0x74] sm:$0xf] }
   0x2   :  { %v485_v3 = vor.u32 %v602_v1, %v484_v0  ;;  %v486_v4 = vld [vmem:[%s855_s1 + $0x78] sm:$0xf0]  ;;  %v476_v5 = vld [vmem:[%s855_s1 + $0x60] sm:$0xf]  ;;  %v600_v6 = vld [vmem:[%s855_s1 + $0x64] sm:$0xf0] }
   0x3   :  { %v489_v7 = vor.u32 %v601_v2, %v486_v4  ;;  %v599_v8 = vld [vmem:[%s855_s1 + $0x64] sm:$0xf]  ;;  %v478_v9 = vld [vmem:[%s855_s1 + $0x68] sm:$0xf0]  ;;  %v477_v10 = vor.u32 %v600_v6, %v476_v5  ;;  %v468_v12 = vld [vmem:[%s855_s1 + $0x50] sm:$0xf] }
   0x4   :  { %136 = vmatpush.bf16.msra.mxu0 %v485_v3  ;;  %v481_v11 = vor.u32 %v599_v8, %v478_v9  ;;  %v598_v13 = vld [vmem:[%s855_s1 + $0x54] sm:$0xf0]  ;;  %v597_v14 = vld [vmem:[%s855_s1 + $0x54] sm:$0xf]  ;;  %v470_v15 = vld [vmem:[%s855_s1 + $0x58] sm:$0xf0] }
   0x5   :  { %150 = vmatpush.bf16.msra.mxu1 %v489_v7  ;;  %v469_v16 = vor.u32 %v598_v13, %v468_v12  ;;  %v473_v17 = vor.u32 %v597_v14, %v470_v15  ;;  %v460_v18 = vld [vmem:[%s855_s1 + $0x40] sm:$0xf]  ;;  %v596_v19 = vld [vmem:[%s855_s1 + $0x44] sm:$0xf0]  ;;  %v595_v20 = vld [vmem:[%s855_s1 + $0x44] sm:$0xf] }
   0x6   :  { %v462_v21 = vld [vmem:[%s855_s1 + $0x48] sm:$0xf0]  ;;  %v461_v22 = vor.u32 %v596_v19, %v460_v18  ;;  %v610_v23 = vld [vmem:[%s856_s3 + $0x38] sm:$0xff]  ;;  %v452_v26 = vld [vmem:[%s855_s1 + $0x30] sm:$0xf] }
   0x7   :  { %v618_v24 = vld [vmem:[%s856_s3 + $0x78] sm:$0xff]  ;;  %v465_v25 = vor.u32 %v595_v20, %v462_v21  ;;  %v593_v28 = vld [vmem:[%s855_s1 + $0x34] sm:$0xf]  ;;  %302 = vmatpush.bf16.msra.mxu2 %v610_v23  ;;  %v444_v34 = vld [vmem:[%s855_s1 + $0x20] sm:$0xf] }
   0x8   :  { %137 = vmatpush.bf16.msra.mxu0 %v477_v10  ;;  %v594_v27 = vld [vmem:[%s855_s1 + $0x34] sm:$0xf0]  ;;  %v454_v29 = vld [vmem:[%s855_s1 + $0x38] sm:$0xf0]  ;;  %316 = vmatpush.bf16.msra.mxu3 %v618_v24  ;;  %v609_v30 = vld [vmem:[%s856_s3 + $0x30] sm:$0xff] }
   0x9   :  { %151 = vmatpush.bf16.msra.mxu1 %v481_v11  ;;  %v617_v31 = vld [vmem:[%s856_s3 + $0x70] sm:$0xff]  ;;  %v453_v32 = vor.u32 %v594_v27, %v452_v26  ;;  %v457_v33 = vor.u32 %v593_v28, %v454_v29  ;;  %v592_v35 = vld [vmem:[%s855_s1 + $0x24] sm:$0xf0]  ;;  %v591_v36 = vld [vmem:[%s855_s1 + $0x24] sm:$0xf] }
   0xa   :  { %v446_v37 = vld [vmem:[%s855_s1 + $0x28] sm:$0xf0]  ;;  %v445_v40 = vor.u32 %v592_v35, %v444_v34  ;;  %v436_v42 = vld [vmem:[%s855_s1 + $0x10] sm:$0xf]  ;;  %v590_v43 = vld [vmem:[%s855_s1 + $0x14] sm:$0xf0] }
   0xb   :  { %303 = vmatpush.bf16.msra.mxu2 %v609_v30  ;;  %v608_v38 = vld [vmem:[%s856_s3 + $0x28] sm:$0xff]  ;;  %v449_v41 = vor.u32 %v591_v36, %v446_v37  ;;  %v589_v44 = vld [vmem:[%s855_s1 + $0x14] sm:$0xf]  ;;  %v438_v45 = vld [vmem:[%s855_s1 + $0x18] sm:$0xf0]  ;;  %v437_v48 = vor.u32 %v590_v43, %v436_v42 }
   0xc   :  { %138 = vmatpush.bf16.msra.mxu0 %v469_v16  ;;  %317 = vmatpush.bf16.msra.mxu3 %v617_v31  ;;  %v616_v39 = vld [vmem:[%s856_s3 + $0x68] sm:$0xff]  ;;  %v607_v46 = vld [vmem:[%s856_s3 + $0x20] sm:$0xff]  ;;  %v441_v49 = vor.u32 %v589_v44, %v438_v45  ;;  %v606_v57 = vld [vmem:[%s856_s3 + $0x18] sm:$0xff] }
   0xd   :  { %152 = vmatpush.bf16.msra.mxu1 %v473_v17  ;;  %v615_v47 = vld [vmem:[%s856_s3 + $0x60] sm:$0xff]  ;;  %v588_v51 = vld [vmem:[%s855_s1 + $0x4] sm:$0xf0]  ;;  %v430_v53 = vld [vmem:[%s855_s1 + $0x8] sm:$0xf0] }
   0xe   :  { %v428_v50 = vld [vmem:[%s855_s1] sm:$0xf]  ;;  %v587_v52 = vld [vmem:[%s855_s1 + $0x4] sm:$0xf]  ;;  %v614_v58 = vld [vmem:[%s856_s3 + $0x58] sm:$0xff] }
   0xf   :  { %304 = vmatpush.bf16.msra.mxu2 %v608_v38  ;;  %v429_v54 = vor.u32 %v588_v51, %v428_v50  ;;  %v433_v55 = vor.u32 %v587_v52, %v430_v53  ;;  %v586_v56 = vld [vmem:[%s857_s0] sm:$0xff]  ;;  %v605_v59 = vld [vmem:[%s856_s3 + $0x10] sm:$0xff]  ;;  %v604_v61 = vld [vmem:[%s856_s3 + $0x8] sm:$0xff] }
  0x10   :  { %139 = vmatpush.bf16.msra.mxu0 %v461_v22  ;;  %318 = vmatpush.bf16.msra.mxu3 %v616_v39  ;;  %v613_v60 = vld [vmem:[%s856_s3 + $0x50] sm:$0xff]  ;;  %v612_v62 = vld [vmem:[%s856_s3 + $0x48] sm:$0xff]  ;;  %v603_v63 = vld [vmem:[%s856_s3] sm:$0xff] }
  0x11   :  { %153 = vmatpush.bf16.msra.mxu1 %v465_v25  ;;  %v611_v0 = vld [vmem:[%s856_s3 + $0x40] sm:$0xff]  ;;  %v626_v1 = vld [vmem:[%s859_s5 + $0x38] sm:$0xff]  ;;  %v625_v2 = vld [vmem:[%s859_s5 + $0x30] sm:$0xff] }
  0x12   :  { %v624_v3 = vld [vmem:[%s859_s5 + $0x28] sm:$0xff]  ;;  %v623_v4 = vld [vmem:[%s859_s5 + $0x20] sm:$0xff]  ;;  %v622_v22 = vld [vmem:[%s859_s5 + $0x18] sm:$0xff] }
  0x13   :  { %305 = vmatpush.bf16.msra.mxu2 %v607_v46  ;;  %v44_v5 = vld [vmem:[%s860_s2] sm:$0x3]  ;;  %v621_v23 = vld [vmem:[%s859_s5 + $0x10] sm:$0xff]  ;;  %v620_v24 = vld [vmem:[%s859_s5 + $0x8] sm:$0xff] }
  0x14   :  { %140 = vmatpush.bf16.msra.mxu0 %v453_v32  ;;  %319 = vmatpush.bf16.msra.mxu3 %v615_v47  ;;  %v46_v8 = vperm.slane %v44_v5, 0  ;;  %v47_v9 = vperm.slane %v44_v5, 1  ;;  %v619_v25 = vld [vmem:[%s859_s5] sm:$0xff] }
  0x15   :  { %154 = vmatpush.bf16.msra.mxu1 %v457_v33  ;;  %v627_v27 = vld [vmem:[%s858_s4] ss:$0 sm:$0xff] }
  0x16   :  { %v628_v38 = vld [vmem:[%s861_s6] ss:$0 sm:$0xff] }
  0x17   :  { %306 = vmatpush.bf16.msra.mxu2 %v606_v57 }
  0x18   :  { %141 = vmatpush.bf16.msra.mxu0 %v445_v40  ;;  %320 = vmatpush.bf16.msra.mxu3 %v614_v58 }
  0x19   :  { %155 = vmatpush.bf16.msra.mxu1 %v449_v41 }
  0x1b   :  { %307 = vmatpush.bf16.msra.mxu2 %v605_v59 }
  0x1c   :  { %142 = vmatpush.bf16.msra.mxu0 %v437_v48  ;;  %321 = vmatpush.bf16.msra.mxu3 %v613_v60 }
  0x1d   :  { %156 = vmatpush.bf16.msra.mxu1 %v441_v49 }
  0x1f   :  { %308 = vmatpush.bf16.msra.mxu2 %v604_v61 }
  0x20   :  { %143 = vmatpush.bf16.msra.mxu0 %v429_v54  ;;  %322 = vmatpush.bf16.msra.mxu3 %v612_v62 }
  0x21   :  { %157 = vmatpush.bf16.msra.mxu1 %v433_v55 }
  0x23   :  { %144 = vmatmul.bf16.vlgmr.msra.gmra.mxu0 %v586_v56  ;;  %309 = vmatpush.bf16.msra.mxu2 %v603_v63 }
  0x24   :  { %158 = vmatmul.bf16.vlgmr.msra.gmra.mxu1 %v586_v56  ;;  %323 = vmatpush.bf16.msra.mxu3 %v611_v0 }
  0x25   :  { %401 = vmatpush.bf16.msrb.mxu0 %v626_v1 }
  0x29   :  { %402 = vmatpush.bf16.msrb.mxu0 %v625_v2 }
  0x2d   :  { %403 = vmatpush.bf16.msrb.mxu0 %v624_v3 }
  0x31   :  { %404 = vmatpush.bf16.msrb.mxu0 %v623_v4 }
  0x35   :  { %405 = vmatpush.bf16.msrb.mxu0 %v622_v22 }
  0x39   :  { %406 = vmatpush.bf16.msrb.mxu0 %v621_v23 }
  0x3d   :  { %407 = vmatpush.bf16.msrb.mxu0 %v620_v24 }
  0x41   :  { %408 = vmatpush.bf16.msrb.mxu0 %v619_v25 }
  0xa0   :  { %v145_v6 = vpop.f32.mrf.mxu0 }
  0xa1   :  { %v159_v7 = vpop.f32.mrf.mxu1  ;;  %v146_v10 = vadd.f32 %v145_v6, %v46_v8 }
  0xa2   :  { %v160_v11 = vadd.f32 %v159_v7, %v47_v9 }
  0xa3   :  { %v164_v16 = vmax.f32 %v146_v10, 0.0 }
  0xa4   :  { %v165_v18 = vmax.f32 %v160_v11, 0.0 }
  0xa8   :  { %v147_v12 = vpop.f32.mrf.mxu0 }
  0xa9   :  { %v148_v13 = vadd.f32 %v147_v12, %v46_v8  ;;  %v161_v14 = vpop.f32.mrf.mxu1 }
  0xaa   :  { %v162_v15 = vadd.f32 %v161_v14, %v47_v9 }
  0xab   :  { %v166_v17 = vmax.f32 %v148_v13, 0.0 }
  0xac   :  { %v167_v19 = vmax.f32 %v162_v15, 0.0 }
  0xad   :  { %v168_v20 = vpack.c.bf16 %v166_v17, %v164_v16 }
  0xae   :  { %v169_v21 = vpack.c.bf16 %v167_v19, %v165_v18 }
  0xaf   :  { %310 = vmatmul.bf16.vlgmr.msra.gmra.mxu2 %v168_v20 }
  0xb0   :  { %324 = vmatmul.bf16.vlgmr.msra.gmra.mxu3 %v169_v21 }
 0x132   :  { %v311_v26 = vpop.f32.mrf.mxu2 }
 0x133   :  { %v325_v28 = vpop.f32.mrf.mxu3  ;;  %v312_v29 = vadd.f32 %v627_v27, %v311_v26 }
 0x135   :  { %v326_v31 = vadd.f32 %v325_v28, %v312_v29 }
 0x137   :  { %v330_v35 = vmax.f32 %v326_v31, 0.0 }
 0x13a   :  { %v313_v30 = vpop.f32.mrf.mxu2 }
 0x13b   :  { %v314_v32 = vadd.f32 %v627_v27, %v313_v30  ;;  %v327_v33 = vpop.f32.mrf.mxu3 }
 0x13d   :  { %v328_v34 = vadd.f32 %v327_v33, %v314_v32 }
 0x13f   :  { %v331_v36 = vmax.f32 %v328_v34, 0.0 }
 0x141   :  { %v332_v37 = vpack.c.bf16 %v331_v36, %v330_v35 }
 0x143   :  { %409 = vmatmul.bf16.vlgmr.msrb.gmra.mxu0 %v332_v37 }
 0x1c0   :  { %v410_v39 = vpop.f32.mrf.mxu0 }
 0x1c1   :  { %v411_v40 = vadd.f32 %v628_v38, %v410_v39 }
 0x1c3   :  { %416 = vst.msk [vmem:[%s862_s7] sm:$0xff] %vm415_vm0, %v411_v40 }
 0x1c8   :  { %v412_v41 = vpop.f32.mrf.mxu0 }
 0x1c9   :  { %v413_v42 = vadd.f32 %v628_v38, %v412_v41 }
 0x1cb   :  { %417 = vst.msk [vmem:[%s862_s7 + $0x8] sm:$0xff] %vm415_vm0, %v413_v42 }

</bundles_post_ra>
